<compile_context>
chip_gen: v7x
topology: tpu7x:2x2x1
jax: 0.10.0
libtpu: 0.0.40
codegen_flags: <defaults>
</compile_context>

<pallas_src>
import jax
import jax.numpy as jnp
from jax.experimental import pallas as pl
from jax.experimental.pallas import tpu as pltpu


def _round_up(a: int, b: int) -> int:
    return (a + b - 1) // b * b


def _cvx_kernel(x_ref, u_ref, s_ref, o_ref):
    """One grid step: single (tile_p*C_pad, d) @ (d, tile_n) matmul, sign-mask,
    reduce the neuron sub-axis, accumulate into the resident output block."""
    p = pl.program_id(1)                       # inner (reduction) grid axis
    tile_p, tile_n = s_ref.shape
    c_pad = o_ref.shape[0]

    # Single large MXU matmul per step (M = tile_p * C_pad rows).
    prod = jnp.dot(u_ref[...], x_ref[...],
                   preferred_element_type=jnp.float32)       # (tile_p*C_pad, tile_n)
    prod = prod.reshape(tile_p, c_pad, tile_n)               # split is (8,128)-aligned

    # Apply the 0/1 sign patterns (broadcast over the class sublanes) and reduce
    # the neuron sub-axis on the VPU.  One batched multiply, no per-neuron loop.
    term = jnp.sum(prod * s_ref[...][:, None, :], axis=0)    # (C_pad, tile_n) f32

    @pl.when(p == 0)
    def _():
        o_ref[...] = term

    @pl.when(p != 0)
    def _():
        o_ref[...] += term


def prepare_cvx_weights(v, w, *, tile_p, compute_dtype=jnp.bfloat16):
    """Fold u = v - w into the kernel's flattened, padded, lane-dense layout.

    In a training loop call this once per parameter update (not per forward):
    u is the largest tensor and the transpose is a full HBM read + write.
    Returns (u_flat, meta) with u_flat of shape (P_pad * C_pad, d).
    """
    P, d, C = v.shape
    c_pad = _round_up(max(C, 8), 8)            # e.g. 10 -> 16 class sublanes
    p_pad = _round_up(P, tile_p)
    u_t = jnp.swapaxes(v - w, 1, 2)            # (P, C, d), feature dim minor
    u_t = jnp.pad(u_t, ((0, p_pad - P), (0, c_pad - C), (0, 0)))
    u_flat = u_t.reshape(p_pad * c_pad, d).astype(compute_dtype)
    return u_flat, (P, p_pad, C, c_pad, d)


def cvx_layer_forward_prepared(x, sign_patterns, u_flat, meta, *, tile_p,
                               tile_n=512, min_batch_tiles=2,
                               compute_dtype=jnp.bfloat16,
                               vmem_limit_bytes=None):
    """Forward pass with pre-prepared weights (see prepare_cvx_weights)."""
    P, p_pad, C, c_pad, d = meta
    N = x.shape[0]
    x2 = x.reshape(N, -1)
    assert x2.shape[1] == d, (x2.shape, d)
    assert sign_patterns.shape == (N, P), sign_patterns.shape
    assert u_flat.shape == (p_pad * c_pad, d), u_flat.shape
    assert p_pad % tile_p == 0

    # Batch tile: multiples of 128 lanes.  Clamp so the "parallel" batch axis
    # has at least min_batch_tiles tiles (keeps both v7x TensorCores busy).
    n128 = _round_up(N, 128)
    tile_n = max(128, (min(tile_n, n128) // 128) * 128)
    if min_batch_tiles > 1:
        cap = max(128, (n128 // min_batch_tiles) // 128 * 128)
        tile_n = min(tile_n, cap)
    n_pad = _round_up(N, tile_n)

    # Lane-dense activation / sign streams (bf16 x, f32 0/1 signs).
    x_t = jnp.swapaxes(x2, 0, 1).astype(compute_dtype)              # (d, N)
    s_t = jnp.swapaxes(sign_patterns, 0, 1).astype(jnp.float32)     # (P, N)
    if n_pad != N:
        x_t = jnp.pad(x_t, ((0, 0), (0, n_pad - N)))
        s_t = jnp.pad(s_t, ((0, 0), (0, n_pad - N)))
    if p_pad != P:
        s_t = jnp.pad(s_t, ((0, p_pad - P), (0, 0)))

    grid = (n_pad // tile_n, p_pad // tile_p)   # (batch tiles, neuron tiles)

    if vmem_limit_bytes is None:
        # Double-buffered input/output blocks + f32 matmul intermediate + headroom.
        wsz = jnp.dtype(compute_dtype).itemsize
        u_blk = tile_p * c_pad * d * wsz
        x_blk = d * tile_n * wsz
        s_blk = tile_p * tile_n * 4
        o_blk = c_pad * tile_n * 4
        prod_blk = tile_p * c_pad * tile_n * 4
        vmem_limit_bytes = max(
            16 << 20, 2 * (u_blk + x_blk + s_blk + o_blk) + 2 * prod_blk + (8 << 20))

    # TODO(synk): for very small d (< 128) the matmul K dim under-fills the MXU;
    # folding several neurons' d-slices into the contraction (masked X) would
    # help there, but for realistic d (= C_in*H*W) it is a non-issue.
    out_t = pl.pallas_call(
        _cvx_kernel,
        out_shape=jax.ShapeDtypeStruct((c_pad, n_pad), jnp.float32),
        grid_spec=pltpu.PrefetchScalarGridSpec(
            num_scalar_prefetch=0,
            grid=grid,
            in_specs=[
                # x^T: index independent of p -> resident across the reduction.
                pl.BlockSpec((d, tile_n), lambda n, p: (0, n)),
                # Flattened weight stream u = v - w, (tile_p*C_pad, d), d minor.
                # (When tile_p == P_pad the block index is constant -> u is
                #  fetched once and stays fully VMEM-resident.)
                pl.BlockSpec((tile_p * c_pad, d), lambda n, p: (p, 0)),
                # Sign patterns, (tile_p, tile_n) with the batch on lanes.
                pl.BlockSpec((tile_p, tile_n), lambda n, p: (p, n)),
            ],
            out_specs=pl.BlockSpec((c_pad, tile_n), lambda n, p: (0, n)),
        ),
        compiler_params=pltpu.CompilerParams(
            dimension_semantics=("parallel", "arbitrary"),
            vmem_limit_bytes=int(vmem_limit_bytes),
        ),
    )(x_t, u_flat, s_t)

    return jnp.swapaxes(out_t[:C, :N], 0, 1)    # (N, C), padded classes dropped


def cvx_layer_forward(x, sign_patterns, v, w, *, tile_n=512, tile_p=None,
                      min_batch_tiles=2, compute_dtype=jnp.bfloat16,
                      vmem_limit_bytes=None):
    """Convenience wrapper: prepares weights every call.  In a training loop,
    call prepare_cvx_weights once per update and use cvx_layer_forward_prepared."""
    P, d, C = v.shape
    c_pad = _round_up(max(C, 8), 8)
    if tile_p is None:
        # Target ~512 matmul rows per grid step (2 MXU passes on v6e/v7x).
        tile_p = max(1, min(P, 512 // c_pad))
    u_flat, meta = prepare_cvx_weights(v, w, tile_p=tile_p,
                                       compute_dtype=compute_dtype)
    return cvx_layer_forward_prepared(
        x, sign_patterns, u_flat, meta, tile_p=tile_p, tile_n=tile_n,
        min_batch_tiles=min_batch_tiles, compute_dtype=compute_dtype,
        vmem_limit_bytes=vmem_limit_bytes)


def cvx_layer_reference(x, sign_patterns, v, w):
    N = x.shape[0]
    x2 = x.reshape(N, -1).astype(jnp.float32)
    u = (v - w).astype(jnp.float32)                      # (P, d, C)
    xu = jnp.einsum('nd,pdc->npc', x2, u)                # (N, P, C)
    return jnp.sum(sign_patterns.astype(jnp.float32)[:, :, None] * xu, axis=1)


if __name__ == "__main__":
    # Small shapes consistent with the module:
    #   batch N=256, input 4x4x4 -> d=64, num_neurons P=32, num_classes C=10.
    N, C_in, H, W = 256, 4, 4, 4
    d = C_in * H * W
    P = 32
    C = 10

    key = jax.random.PRNGKey(0)
    kx, ks, kv, kw = jax.random.split(key, 4)

    x = jax.random.normal(kx, (N, C_in, H, W), dtype=jnp.float32)
    # 0/1 sign-pattern indicators (float), like (Xu >= 0) in the paper's setup.
    sign_patterns = (jax.random.uniform(ks, (N, P)) > 0.5).astype(jnp.float32)
    # Module __init__ zero-inits v, w; use small deterministic random values so
    # the kernel output is non-trivial (shapes match the module exactly).
    v = 0.1 * jax.random.normal(kv, (P, d, C), dtype=jnp.float32)
    w = 0.1 * jax.random.normal(kw, (P, d, C), dtype=jnp.float32)

    # tile_p=16 -> 2 neuron tiles (exercises the in-place accumulation path);
    # min_batch_tiles=2 clamps tile_n to 128 -> 2 batch tiles (v7x megacore).
    y = cvx_layer_forward(x, sign_patterns, v, w, tile_p=16)
    y = jax.block_until_ready(y)

    y_ref = cvx_layer_reference(x, sign_patterns, v, w)
    assert y.shape == (N, C), y.shape
    # bf16 weight/activation stream with f32 accumulation -> relative check.
    err = float(jnp.max(jnp.abs(y - y_ref)))
    scale = float(jnp.max(jnp.abs(y_ref))) + 1e-6
    assert err / scale < 2e-2, (err, scale)
    print("KERNEL_OK")
</pallas_src>

<mosaic_0001>
module attributes {stable_mosaic.version = 11 : i64} {
  func.func @_cvx_kernel(%arg0: i32, %arg1: i32, %arg2: memref<64x128xbf16, #tpu.memory_space<vmem>>, %arg3: memref<256x64xbf16, #tpu.memory_space<vmem>>, %arg4: memref<16x128xf32, #tpu.memory_space<vmem>>, %arg5: memref<16x128xf32, #tpu.memory_space<vmem>>) attributes {dimension_semantics = [#tpu.dimension_semantics<parallel>, #tpu.dimension_semantics<arbitrary>], iteration_bounds = array<i64: 2, 2>, scalar_prefetch = 0 : i64, scratch_operands = 0 : i64, tpu.core_type = #tpu.core_type<tc>, window_params = [{transform_indices = @transform_0, window_bounds = array<i64: 64, 128>}, {transform_indices = @transform_1, window_bounds = array<i64: 256, 64>}, {transform_indices = @transform_2, window_bounds = array<i64: 16, 128>}, {transform_indices = @transform_3, window_bounds = array<i64: 16, 128>}]} {
    %c0 = arith.constant 0 : index
    %c0_0 = arith.constant 0 : index
    %0 = vector.load %arg3[%c0, %c0_0] : memref<256x64xbf16, #tpu.memory_space<vmem>>, vector<256x64xbf16>
    %c0_1 = arith.constant 0 : index
    %c0_2 = arith.constant 0 : index
    %1 = vector.load %arg2[%c0_1, %c0_2] : memref<64x128xbf16, #tpu.memory_space<vmem>>, vector<64x128xbf16>
    %cst = arith.constant dense<0.000000e+00> : vector<256x128xf32>
    %2 = tpu.matmul %0, %1, %cst {dimension_numbers = #tpu.dot_dimension_numbers<[1], [0], [0], [1], [0, 0, 1, 1], [], []>} : vector<256x64xbf16>, vector<64x128xbf16>, vector<256x128xf32> -> vector<256x128xf32>
    %3 = vector.shape_cast %2 : vector<256x128xf32> to vector<16x16x128xf32>
    %c0_3 = arith.constant 0 : index
    %c0_4 = arith.constant 0 : index
    %4 = vector.load %arg4[%c0_3, %c0_4] : memref<16x128xf32, #tpu.memory_space<vmem>>, vector<16x128xf32>
    %5 = vector.shape_cast %4 : vector<16x128xf32> to vector<16x1x128xf32>
    %6 = vector.broadcast %5 : vector<16x1x128xf32> to vector<16x16x128xf32>
    %7 = arith.mulf %3, %6 : vector<16x16x128xf32>
    %cst_5 = arith.constant dense<0.000000e+00> : vector<16x128xf32>
    %8 = vector.multi_reduction <add>, %7, %cst_5 [0] : vector<16x16x128xf32> to vector<16x128xf32>
    %c0_i32 = arith.constant 0 : i32
    %9 = arith.cmpi eq, %arg1, %c0_i32 : i32
    %10 = arith.extui %9 : i1 to i32
    %c0_i32_6 = arith.constant 0 : i32
    %11 = arith.cmpi ne, %10, %c0_i32_6 : i32
    scf.if %11 {
      %c0_9 = arith.constant 0 : index
      %c0_10 = arith.constant 0 : index
      %15 = vector.load %arg5[%c0_9, %c0_10] : memref<16x128xf32, #tpu.memory_space<vmem>>, vector<16x128xf32>
      tpu.vector_store %arg5[%c0_9, %c0_10], %8 {strides = array<i32>} : memref<16x128xf32, #tpu.memory_space<vmem>>, vector<16x128xf32>,
    } else {
    }
    %c0_i32_7 = arith.constant 0 : i32
    %12 = arith.cmpi ne, %arg1, %c0_i32_7 : i32
    %13 = arith.extui %12 : i1 to i32
    %c0_i32_8 = arith.constant 0 : i32
    %14 = arith.cmpi ne, %13, %c0_i32_8 : i32
    scf.if %14 {
      %c0_9 = arith.constant 0 : index
      %c0_10 = arith.constant 0 : index
      %15 = vector.load %arg5[%c0_9, %c0_10] : memref<16x128xf32, #tpu.memory_space<vmem>>, vector<16x128xf32>
      %16 = arith.addf %15, %8 : vector<16x128xf32>
      %c0_11 = arith.constant 0 : index
      %c0_12 = arith.constant 0 : index
      %17 = vector.load %arg5[%c0_11, %c0_12] : memref<16x128xf32, #tpu.memory_space<vmem>>, vector<16x128xf32>
      tpu.vector_store %arg5[%c0_11, %c0_12], %16 {strides = array<i32>} : memref<16x128xf32, #tpu.memory_space<vmem>>, vector<16x128xf32>,
    } else {
    }
    return
  }
  func.func @transform_0(%arg0: i32, %arg1: i32) -> (i32, i32) {
    %c0_i32 = arith.constant 0 : i32
    %c0_i32_0 = arith.constant 0 : i32
    return %c0_i32, %arg0 : i32, i32
  }
  func.func @transform_1(%arg0: i32, %arg1: i32) -> (i32, i32) {
    %c0_i32 = arith.constant 0 : i32
    %c0_i32_0 = arith.constant 0 : i32
    return %arg1, %c0_i32 : i32, i32
  }
  func.func @transform_2(%arg0: i32, %arg1: i32) -> (i32, i32) {
    %c0_i32 = arith.constant 0 : i32
    return %arg1, %arg0 : i32, i32
  }
  func.func @transform_3(%arg0: i32, %arg1: i32) -> (i32, i32) {
    %c0_i32 = arith.constant 0 : i32
    %c0_i32_0 = arith.constant 0 : i32
    return %c0_i32, %arg0 : i32, i32
  }
}

</mosaic_0001>

<bundles_post_ra>
// kernel: tpu_custom_call.1
= control target key start
LH: loop header
LB: loop body
LE: loop exit
PB: predicated region body
PF: predicated region fallthrough
CT: control target
= control target key end

     0   :  { %8 = vsyncpa [#allocation5], 0  ;;  %s1753_s0 = inlined_call_operand.vmem [shape: bf16[64,256], index: 0, kind: input, shape index: {}]   ;;  %s1754_s1 = inlined_call_operand.vmem [shape: bf16[512,64], index: 1, kind: input, shape index: {}]   ;;  %s1755_s2 = inlined_call_operand.vmem [shape: f32[32,256], index: 2, kind: input, shape index: {}]   ;;  %s1756_s3 = inlined_call_operand.hbm [shape: f32[16,256], index: 3, kind: output, shape index: {}]  }
   0x1   :  { %10 = vsyncpa [#allocation5 + $0x1], 0  ;;  %s1452_s12 = smov 0   ;;  %s1454_s13 = smov 0  }
   0x2   :  { %s1456_s14 = smov 0   ;;  %s1458_s15 = smov 0  }
   0x3   :  { %s1460_s16 = smov 0   ;;  %s1462_s17 = smov 0  }
   0x4   :  { %s1464_s18 = smov 0   ;;  %s1466_s19 = smov 0  }
   0x5   :  { %s1468_s20 = smov 0   ;;  %s1470_s21 = smov 0  }
   0x6 LB: > { %s1075_s22 = sadd.s32 4294967295, %s1425_s21   ;;  %s1076_s23 = sadd.s32 4294967294, %s1425_s21   ;;  %s1425_s21 = sphi %s1470_s21, %s16_s21   ;;  %s1421_s20 = sphi %s1468_s20, %s1769_s20   ;;  %s1417_s19 = sphi %s1466_s19, %s1768_s19   ;;  %s1413_s18 = sphi %s1464_s18, %s1767_s18   ;;  %s1409_s17 = sphi %s1462_s17, %s1766_s17   ;;  %s1405_s16 = sphi %s1460_s16, %s1765_s16   ;;  %s1401_s15 = sphi %s1458_s15, %s1764_s15   ;;  %s1397_s14 = sphi %s1456_s14, %s1763_s14   ;;  %s1393_s13 = sphi %s1454_s13, %s1762_s13   ;;  %s1389_s12 = sphi %s1452_s12, %s1761_s12  }
   0x7   : > { %s25_s24 = sadd.s32 1, %s1417_s19  ;;  %s28_s25 = sadd.s32 1, %s1421_s20 }
   0x8   : > { %p26_p0 = scmp.ge.s32.totalorder %s25_s24, 2  ;;  %s35_s26 = sadd.s32 1, %s1405_s16 }
   0x9   : > { %p42_p1 = scmp.ne.s32.totalorder %s1405_s16, %s1401_s15  ;;  %p43_p2 = scmp.eq.s32.totalorder %s1425_s21, 0 }
   0xa   : > { %s1771_s24 = smov (%p26_p0, %s25_s24), 0  ;;  %s1773_s25 = smov (!%p26_p0, %s28_s25), %s1421_s20 }
   0xb   : > { %p1513_p3 = por %p43_p2, %p42_p1  ;;  %s84_s28 = ssub.s32 %s1417_s19, %s1771_s24 }
   0xc   : > { %p30_p4 = scmp.ge.s32.totalorder %s1773_s25, 2  ;;  %s89_s29 = sadd.s32 1, %s1397_s14 }
   0xd   : > { %p96_p5 = scmp.ne.s32.totalorder %s1397_s14, %s1393_s13  ;;  %p126_p6 = scmp.eq.s32.totalorder %s1075_s22, 3 }
   0xe   : > { %s1775_s25 = smov (%p30_p4, %s1773_s25), 0  ;;  %p131_p9 = scmp.ne.s32.totalorder %s1401_s15, %s1389_s12 }
   0xf   : > { %p1524_p7 = por %p96_p5, %p43_p2  ;;  %p1528_p8 = por %p126_p6, %p42_p1 }
  0x10   : > { %s32_s5 = ssub.s32 %s1421_s20, %s1775_s25  ;;  %p132_p12 = scmp.eq.s32.totalorder %s1076_s23, 3 }
  0x11   : > { %p33_p10 = scmp.eq.s32.totalorder %s32_s5, 0  ;;  %s86_s6 = sor.u32 %s84_s28, %s32_s5 }
  0x12   : > { %p87_p11 = scmp.eq.s32.totalorder %s86_s6, 0  ;;  %p1542_p13 = por %p132_p12, %p131_p9 }
  0x13   : > { %s1537_s7 = scalar_select %p33_p10, %s1405_s16, %s35_s26  }
  0x14   : > { %s1540_s8 = scalar_select %p87_p11, %s1397_s14, %s89_s29  }
  0x15   : > { %p1078_p0 = scmp.ge.s32.totalorder %s1425_s21, 4 }
  0x17   : > { %148 = sbr.rel (%p1078_p0) target bundleno = 46 (0x2e), region = 16 }
  0x1e   : > { %151 = sbr.rel (!%p1513_p3) target bundleno = 39 (0x27), region = 20  ;;  %s153_s10 = sand.u32 (%p1513_p3), 1, %s1405_s16  }
  0x1f   : > { %s1080_s11 = sshll.u32 (%p1513_p3), %s1421_s20, 2  ;;  %s1079_s22 = sshll.u32 (%p1513_p3), %s153_s10, 5 }
  0x20   : > { %s157_s28 = scalar_lea.vmem (%p1513_p3), %s1753_s0, %s1080_s11  ;;  %s155_s29 = scalar_lea.vmem (%p1513_p3), [#allocation2], %s1079_s22 }
  0x21   : > { %v173_v0 = vld [vmem:[%s157_s28] sm:$0xf] (%p1513_p3)  ;;  %v175_v1 = vld [vmem:[%s157_s28 + $0x8] sm:$0xf] (%p1513_p3)  ;;  %v177_v2 = vld [vmem:[%s157_s28 + $0x10] sm:$0xf] (%p1513_p3) }
  0x22   : > { %174 = vst [vmem:[%s155_s29] sm:$0xf] (%p1513_p3), %v173_v0  ;;  %176 = vst [vmem:[%s155_s29 + $0x4] sm:$0xf] (%p1513_p3), %v175_v1  ;;  %v179_v3 = vld [vmem:[%s157_s28 + $0x18] sm:$0xf] (%p1513_p3) }
  0x23   : > { %v181_v4 = vld [vmem:[%s157_s28 + $0x20] sm:$0xf] (%p1513_p3)  ;;  %178 = vst [vmem:[%s155_s29 + $0x8] sm:$0xf] (%p1513_p3), %v177_v2  ;;  %180 = vst [vmem:[%s155_s29 + $0xc] sm:$0xf] (%p1513_p3), %v179_v3 }
  0x24   : > { %182 = vst [vmem:[%s155_s29 + $0x10] sm:$0xf] (%p1513_p3), %v181_v4  ;;  %v183_v5 = vld [vmem:[%s157_s28 + $0x28] sm:$0xf] (%p1513_p3)  ;;  %v185_v6 = vld [vmem:[%s157_s28 + $0x30] sm:$0xf] (%p1513_p3) }
  0x25   : > { %v187_v7 = vld [vmem:[%s157_s28 + $0x38] sm:$0xf]  ;;  %184 = vst [vmem:[%s155_s29 + $0x14] sm:$0xf] %v183_v5  ;;  %186 = vst [vmem:[%s155_s29 + $0x18] sm:$0xf] %v185_v6 }
  0x26   : > { %188 = vst [vmem:[%s155_s29 + $0x1c] sm:$0xf] %v187_v7 }
  0x27 PF: > { %236 = sbr.rel (!%p1524_p7) target bundleno = 46 (0x2e), region = 65  ;;  %s238_s27 = sand.u32 (%p1524_p7), 1, %s1397_s14  }
  0x28   : > { %s1133_s5 = sshll.u32 (%p1524_p7), %s1417_s19, 2  ;;  %s1081_s6 = sshll.u32 (%p1524_p7), %s238_s27, 4 }
  0x29   : > { %s243_s10 = sadd.s32 (%p1524_p7), %s1421_s20, %s1133_s5  ;;  %s240_s28 = scalar_lea.vmem (%p1524_p7), [#allocation3], %s1081_s6 }
  0x2a   : > { %s1084_s11 = sshll.u32 (%p1524_p7), %s243_s10, 3 }
  0x2b   : > { %s245_s26 = scalar_lea.vmem (%p1524_p7), %s1755_s2, %s1084_s11 }
  0x2c   : > { %v275_v8 = vld [vmem:[%s245_s26] sm:$0xff] (%p1524_p7)  ;;  %v277_v9 = vld [vmem:[%s245_s26 + $0x10] sm:$0xff] (%p1524_p7) }
  0x2d   : > { %276 = vst [vmem:[%s240_s28] sm:$0xff] (%p1524_p7), %v275_v8  ;;  %278 = vst [vmem:[%s240_s28 + $0x8] sm:$0xff] (%p1524_p7), %v277_v9 }
  0x2e PF: > { %p1085_p1 = scmp.ge.s32.totalorder %s1425_s21, 1  ;;  %p283_p2 = scmp.lt.s32.totalorder %s1425_s21, 5 }
  0x30   : > { %p284_p3 = pnand %p1085_p1, %p283_p2 }
  0x31   : > { %s1565_s30 = sand.u32 (!%p284_p3), 1, %s1401_s15   ;;  %s1089_s29 = sshll.u32 (!%p284_p3), %s1409_s17, 5  ;;  %vm481_vm0 = vcmask (!%p284_p3), 523264   ;;  %v1427_v30 = vmov (!%p284_p3), 1966171168   ;;  %v699_v32 = vlaneseq (!%p284_p3) }
  0x32   : > { %287 = sbr.rel (%p284_p3) target bundleno = 367 (0x16f), region = 103  ;;  %s1086_s27 = sshll.u32 (!%p284_p3), %s1565_s30, 5  ;;  %v697_v31 = vunpack.c.l.s4 (!%p284_p3), %v1427_v30 }
  0x33   : > { %s1088_s5 = sshll.u32 (!%p284_p3), %s1565_s30, 4  ;;  %s292_s6 = scalar_lea.vmem (!%p284_p3), [#allocation2], %s1086_s27  ;;  %v700_v34 = vshrl.u32 (!%p284_p3), %v699_v32, 7 }
  0x34   : > { %v1293_v10 = vld [vmem:[%s292_s6] sm:$0xff] (!%p284_p3)   ;;  %p330_p4 = scmp.lt.s32.totalorder (!%p284_p3), %s1089_s29, 63  ;;  %v1294_v11 = vld [vmem:[%s292_s6 + $0x8] sm:$0xff] (!%p284_p3)   ;;  %v1295_v12 = vld [vmem:[%s292_s6 + $0x10] sm:$0xff] (!%p284_p3)   ;;  %s297_s26 = sand.u32 (!%p284_p3), 1, %s1393_s13   ;;  %v698_v33 = vunpack.c.0.s8 (!%p284_p3), %v697_v31 }
  0x35   : > { %1154 = vmatprep.subr.bf16.mxu0 (!%p284_p3), %v1293_v10  ;;  %1194 = vmatprep.subr.bf16.mxu1 (!%p284_p3), %v1293_v10  ;;  %v1296_v14 = vld [vmem:[%s292_s6 + $0x18] sm:$0xff] (!%p284_p3)   ;;  %s1608_s28 = sshll.u32 (!%p284_p3), %s297_s26, 4  ;;  %v1617_v40 = vsub.s32 (!%p284_p3), 0, %v700_v34  ;;  %s328_s13 = scalar_lea.vmem (!%p284_p3), [#allocation4], %s1088_s5 }
  0x36   : > { %1155 = vmatpush3.bf16.msra.mxu0 (!%p284_p3), %v1293_v10  ;;  %1198 = vmatpush3.bf16.msra.mxu1 (!%p284_p3), %v1293_v10  ;;  %v1610_v35 = vsub.s32 (!%p284_p3), %v698_v33, %v700_v34  ;;  %p1127_p5 = scmp.ne.s32.totalorder (!%p284_p3), %s1409_s17, 0 }
  0x37   : > { %1156 = vmatprep.subr.bf16.mxu0 (!%p284_p3), %v1294_v11  ;;  %1195 = vmatprep.subr.bf16.mxu1 (!%p284_p3), %v1294_v11 }
  0x39   : > { %s1777_s29 = smov (!%p330_p4, %s1089_s29), 63 }
  0x3a   : > { %s1090_s10 = sshll.u32 %s1777_s29, 2  ;;  %1157 = vmatpush3.bf16.msra.mxu0 %v1294_v11  ;;  %1199 = vmatpush3.bf16.msra.mxu1 %v1294_v11  ;;  %s299_s29 = scalar_lea.vmem [#allocation3], %s1608_s28 }
  0x3b   : > { %s1573_s23 = scalar_lea.vmem %s1754_s1, %s1090_s10  ;;  %1158 = vmatprep.subr.bf16.mxu0 %v1295_v12  ;;  %1196 = vmatprep.subr.bf16.mxu1 %v1295_v12  ;;  %v691_v36 = vld [vmem:[%s299_s29] sm:$0xff] }
  0x3c   : > { %v1297_v13 = vld [vmem:[%s1573_s23] sm:$0xff]   ;;  %v1298_v16 = vld [vmem:[%s1573_s23 + $0x8] sm:$0xff]   ;;  %v1299_v17 = vld [vmem:[%s1573_s23 + $0x10] sm:$0xff]   ;;  %v702_v37 = vrot.slane %v691_v36, %v1610_v35  ;;  %v695_v46 = vcombine.high %v691_v36, %v691_v36 }
  0x3d   : > { %1162 = vmatprep.mubr.msk.bf16.mxu0 %vm481_vm0, %v1297_v13  ;;  %v1301_v15 = vld [vmem:[%s1573_s23 + $0x40] sm:$0xff]   ;;  %v1302_v18 = vld [vmem:[%s1573_s23 + $0x48] sm:$0xff]   ;;  %v1305_v19 = vld [vmem:[%s1573_s23 + $0x50] sm:$0xff]  }
  0x3e   : > { %1159 = vmatpush3.bf16.msra.mxu0 %v1295_v12  ;;  %1200 = vmatpush3.bf16.msra.mxu1 %v1295_v12  ;;  %v1300_v20 = vld [vmem:[%s1573_s23 + $0x18] sm:$0xff]   ;;  %v1303_v22 = vld [vmem:[%s1573_s23 + $0x20] sm:$0xff]   ;;  %v1304_v24 = vld [vmem:[%s1573_s23 + $0x28] sm:$0xff]   ;;  %v710_v38 = vcombine.high %v702_v37, %v702_v37  ;;  %v718_v41 = vrot.slane %v702_v37, %v1610_v35  ;;  %v709_v60 = vrot.slane %v695_v46, %v1610_v35 }
  0x3f   : > { %1160 = vmatprep.subr.bf16.mxu0 %v1296_v14  ;;  %1197 = vmatprep.subr.bf16.mxu1 %v1296_v14  ;;  %v1306_v21 = vld [vmem:[%s1573_s23 + $0x58] sm:$0xff]   ;;  %v1309_v23 = vld [vmem:[%s1573_s23 + $0x60] sm:$0xff]   ;;  %v1310_v25 = vld [vmem:[%s1573_s23 + $0x68] sm:$0xff]  }
  0x40   : > { %1178 = vmatprep.mubr.msk.bf16.mxu1 %vm481_vm0, %v1301_v15  ;;  %v1307_v26 = vld [vmem:[%s1573_s23 + $0x30] sm:$0xff]   ;;  %v1308_v28 = vld [vmem:[%s1573_s23 + $0x38] sm:$0xff]   ;;  %v732_v39 = vrot.slane %v710_v38, %v1610_v35  ;;  %v796_v43 = vrot.slane %v718_v41, %v1617_v40  ;;  %v740_v52 = vcombine.high %v718_v41, %v718_v41  ;;  %v711_v1 = vcombine.high %v709_v60, %v709_v60 }
  0x41   : > { %v1311_v27 = vld [vmem:[%s1573_s23 + $0x70] sm:$0xff]   ;;  %v1312_v29 = vld [vmem:[%s1573_s23 + $0x78] sm:$0xff]   ;;  %v725_v7 = vrot.slane %v709_v60, %v1610_v35 }
  0x42   : > { %1161 = vmatpush3.bf16.msra.mxu0 %v1296_v14  ;;  %1201 = vmatpush3.bf16.msra.mxu1 %v1296_v14  ;;  %v800_v42 = vrot.slane %v732_v39, %v1617_v40  ;;  %v742_v59 = vcombine.high %v732_v39, %v732_v39  ;;  %v804_v62 = vrot.slane %v740_v52, %v1617_v40  ;;  %v692_v14 = vld [vmem:[%s299_s29 + $0x8] sm:$0xff] }
  0x43   : > { %v739_v15 = vrot.slane %v711_v1, %v1610_v35  ;;  %v744_v33 = vcombine.high %v692_v14, %v692_v14 }
  0x44   : > { %v808_v0 = vrot.slane %v742_v59, %v1617_v40 }
  0x45   : > { %1163 = vmatmul.mubr.msk.bf16.vlgmr.msra.gmra.mrb[0].mxu0 %vm481_vm0, %v1298_v16  ;;  %1179 = vmatmul.mubr.msk.bf16.vlgmr.msra.gmra.mrb[0].mxu1 %vm481_vm0, %v1302_v18  ;;  %v812_v18 = vrot.slane %v725_v7, %v1617_v40  ;;  %v743_v39 = vcombine.high %v739_v15, %v739_v15 }
  0x46   : > { %1166 = vmatprep.mubr.msk.bf16.mxu0 %vm481_vm0, %v1299_v17  ;;  %1182 = vmatprep.mubr.msk.bf16.mxu1 %vm481_vm0, %v1305_v19 }
  0x4d   : > { %1167 = vmatmul.mubr.msk.bf16.gmra.mrb[4].mxu0 %vm481_vm0, %v1300_v20  ;;  %1183 = vmatmul.mubr.msk.bf16.gmra.mrb[4].mxu1 %vm481_vm0, %v1306_v21  ;;  %v751_v20 = vrot.slane %v692_v14, %v1610_v35 }
  0x4e   : > { %1170 = vmatprep.mubr.msk.bf16.mxu0 %vm481_vm0, %v1303_v22  ;;  %1186 = vmatprep.mubr.msk.bf16.mxu1 %vm481_vm0, %v1309_v23  ;;  %v816_v22 = vrot.slane %v739_v15, %v1617_v40 }
  0x4f   : > { %v759_v31 = vcombine.high %v751_v20, %v751_v20  ;;  %v767_v41 = vrot.slane %v751_v20, %v1610_v35 }
  0x51   : > { %v828_v59 = vrot.slane %v767_v41, %v1617_v40 }
  0x55   : > { %1171 = vmatmul.mubr.msk.bf16.gmra.mrb[8].mxu0 %vm481_vm0, %v1304_v24  ;;  %1187 = vmatmul.mubr.msk.bf16.gmra.mrb[8].mxu1 %vm481_vm0, %v1310_v25 }
  0x56   : > { %1174 = vmatprep.mubr.msk.bf16.mxu0 %vm481_vm0, %v1307_v26  ;;  %1190 = vmatprep.mubr.msk.bf16.mxu1 %vm481_vm0, %v1311_v27 }
  0x5d   : > { %1175 = vmatmul.mubr.msk.bf16.gmra.mrb[12].mxu0 %vm481_vm0, %v1308_v28  ;;  %1191 = vmatmul.mubr.msk.bf16.gmra.mrb[12].mxu1 %vm481_vm0, %v1312_v29  ;;  %v741_v29 = vcombine.high %v725_v7, %v725_v7 }
 0x118   : > { %v1164_v44 = vpop.f32.mrb[0].mxu0  ;;  %v1622_v45 = vpop.f32.mrb[0].mxu1 }
 0x119   : > { %v875_v47 = vmul.f32 %v1164_v44, %v800_v42  ;;  %v564_v48 = vpop.f32.mrb[1].mxu0  ;;  %v1624_v49 = vpop.f32.mrb[1].mxu1  ;;  %v820_v44 = vrot.slane %v741_v29, %v1617_v40 }
 0x11a   : > { %v873_v50 = vmul.f32 %v796_v43, %v564_v48  ;;  %v1165_v51 = vpop.f32.mrb[2].mxu0  ;;  %v1626_v53 = vpop.f32.mrb[2].mxu1  ;;  %v781_v48 = vrot.slane %v759_v31, %v1610_v35 }
 0x11b   : > { %v876_v54 = vmul.f32 %v1165_v51, %v800_v42  ;;  %v567_v55 = vpop.f32.mrb[3].mxu0  ;;  %v1628_v56 = vpop.f32.mrb[3].mxu1  ;;  %v824_v51 = vrot.slane %v743_v39, %v1617_v40 }
 0x11c   : > { %v905_v57 = vadd.f32 %v875_v47, %v873_v50  ;;  %v874_v58 = vmul.f32 %v796_v43, %v567_v55  ;;  %v758_v47 = vrot.slane %v744_v33, %v1610_v35  ;;  %v789_v55 = vcombine.high %v767_v41, %v767_v41 }
 0x11e   : > { %v920_v61 = vadd.f32 %v876_v54, %v874_v58  ;;  %v760_v1 = vcombine.high %v758_v47, %v758_v47 }
 0x120   : > { %v1168_v63 = vpop.f32.mrb[4].mxu0  ;;  %v1633_v2 = vpop.f32.mrb[4].mxu1 }
 0x121   : > { %v580_v3 = vpop.f32.mrb[5].mxu0  ;;  %v1635_v4 = vpop.f32.mrb[5].mxu1  ;;  %v879_v11 = vmul.f32 %v1168_v63, %v808_v0  ;;  %v791_v63 = vcombine.high %v781_v48, %v781_v48 }
 0x122   : > { %v877_v5 = vmul.f32 %v804_v62, %v580_v3  ;;  %v1169_v6 = vpop.f32.mrb[6].mxu0  ;;  %v1638_v8 = vpop.f32.mrb[6].mxu1 }
 0x123   : > { %v583_v9 = vpop.f32.mrb[7].mxu0  ;;  %v1640_v10 = vpop.f32.mrb[7].mxu1  ;;  %v880_v16 = vmul.f32 %v1169_v6, %v808_v0 }
 0x124   : > { %v906_v12 = vadd.f32 %v905_v57, %v877_v5  ;;  %v878_v13 = vmul.f32 %v804_v62, %v583_v9  ;;  %v832_v5 = vrot.slane %v781_v48, %v1617_v40 }
 0x126   : > { %v921_v17 = vadd.f32 %v920_v61, %v878_v13  ;;  %v907_v19 = vadd.f32 %v906_v12, %v879_v11  ;;  %v836_v11 = vrot.slane %v789_v55, %v1617_v40  ;;  %v774_v12 = vrot.slane %v758_v47, %v1610_v35 }
 0x127   : > { %v889_v13 = vmul.f32 %v828_v59, %v1624_v49  ;;  %v891_v20 = vmul.f32 %v1622_v45, %v832_v5 }
 0x128   : > { %v1172_v21 = vpop.f32.mrb[8].mxu0  ;;  %v922_v23 = vadd.f32 %v921_v17, %v880_v16  ;;  %v1648_v24 = vpop.f32.mrb[8].mxu1  ;;  %v840_v17 = vrot.slane %v791_v63, %v1617_v40  ;;  %v893_v49 = vmul.f32 %v836_v11, %v1635_v4  ;;  %v894_v45 = vmul.f32 %v836_v11, %v1640_v10 }
 0x129   : > { %v596_v25 = vpop.f32.mrb[9].mxu0  ;;  %v1650_v26 = vpop.f32.mrb[9].mxu1  ;;  %v883_v36 = vmul.f32 %v1172_v21, %v816_v22  ;;  %v890_v21 = vmul.f32 %v828_v59, %v1628_v56 }
 0x12a   : > { %v881_v27 = vmul.f32 %v812_v18, %v596_v25  ;;  %v1173_v28 = vpop.f32.mrb[10].mxu0  ;;  %v1652_v30 = vpop.f32.mrb[10].mxu1  ;;  %v844_v25 = vrot.slane %v774_v12, %v1617_v40  ;;  %v895_v33 = vmul.f32 %v1633_v2, %v840_v17 }
 0x12b   : > { %v599_v32 = vpop.f32.mrb[11].mxu0  ;;  %v1654_v34 = vpop.f32.mrb[11].mxu1  ;;  %v884_v42 = vmul.f32 %v1173_v28, %v816_v22 }
 0x12c   : > { %v908_v37 = vadd.f32 %v907_v19, %v881_v27  ;;  %v882_v38 = vmul.f32 %v812_v18, %v599_v32  ;;  %v788_v18 = vrot.slane %v760_v1, %v1610_v35  ;;  %v790_v19 = vcombine.high %v774_v12, %v774_v12 }
 0x12d   : > { %v892_v27 = vmul.f32 %v1626_v53, %v832_v5 }
 0x12e   : > { %v923_v43 = vadd.f32 %v922_v23, %v882_v38  ;;  %v909_v46 = vadd.f32 %v908_v37, %v883_v36  ;;  %v848_v31 = vrot.slane %v788_v18, %v1617_v40  ;;  %v792_v32 = vcombine.high %v788_v18, %v788_v18 }
 0x12f   : > { %v852_v35 = vrot.slane %v790_v19, %v1617_v40  ;;  %v896_v37 = vmul.f32 %v1638_v8, %v840_v17  ;;  %v897_v38 = vmul.f32 %v844_v25, %v1650_v26 }
 0x130   : > { %v1176_v50 = vpop.f32.mrb[12].mxu0  ;;  %v924_v52 = vadd.f32 %v923_v43, %v884_v42  ;;  %v1192_v54 = vpop.f32.mrb[12].mxu1  ;;  %v899_v4 = vmul.f32 %v1648_v24, %v848_v31  ;;  %v856_v41 = vrot.slane %v792_v32, %v1617_v40  ;;  %v898_v43 = vmul.f32 %v844_v25, %v1654_v34 }
 0x131   : > { %v612_v57 = vpop.f32.mrb[13].mxu0  ;;  %v676_v58 = vpop.f32.mrb[13].mxu1  ;;  %v887_v6 = vmul.f32 %v1176_v50, %v824_v51  ;;  %v900_v10 = vmul.f32 %v1652_v30, %v848_v31 }
 0x132   : > { %v885_v60 = vmul.f32 %v820_v44, %v612_v57  ;;  %v1177_v61 = vpop.f32.mrb[14].mxu0  ;;  %v1193_v62 = vpop.f32.mrb[14].mxu1  ;;  %v901_v2 = vmul.f32 %v852_v35, %v676_v58  ;;  %v903_v48 = vmul.f32 %v1192_v54, %v856_v41 }
 0x133   : > { %v615_v0 = vpop.f32.mrb[15].mxu0  ;;  %v679_v3 = vpop.f32.mrb[15].mxu1  ;;  %v888_v15 = vmul.f32 %v1177_v61, %v824_v51 }
 0x134   : > { %v910_v7 = vadd.f32 %v909_v46, %v885_v60  ;;  %v886_v9 = vmul.f32 %v820_v44, %v615_v0  ;;  %v902_v50 = vmul.f32 %v852_v35, %v679_v3 }
 0x136   : > { %v911_v14 = vadd.f32 %v910_v7, %v887_v6  ;;  %v925_v16 = vadd.f32 %v924_v52, %v886_v9  ;;  %v904_v52 = vmul.f32 %v1193_v62, %v856_v41 }
 0x138   : > { %v912_v22 = vadd.f32 %v911_v14, %v889_v13  ;;  %v926_v23 = vadd.f32 %v925_v16, %v888_v15 }
 0x13a   : > { %v927_v28 = vadd.f32 %v926_v23, %v890_v21  ;;  %v913_v29 = vadd.f32 %v912_v22, %v891_v20 }
 0x13c   : > { %v914_v56 = vadd.f32 %v913_v29, %v893_v49  ;;  %v928_v36 = vadd.f32 %v927_v28, %v892_v27 }
 0x13e   : > { %v915_v53 = vadd.f32 %v914_v56, %v895_v33  ;;  %v929_v39 = vadd.f32 %v928_v36, %v894_v45 }
 0x140   : > { %v916_v42 = vadd.f32 %v915_v53, %v897_v38  ;;  %v930_v44 = vadd.f32 %v929_v39, %v896_v37 }
 0x142   : > { %v931_v46 = vadd.f32 %v930_v44, %v898_v43  ;;  %v917_v47 = vadd.f32 %v916_v42, %v899_v4  ;;  %938 = sbr.rel (%p1127_p5) target bundleno = 331 (0x14b), region = 115 }
 0x144   : > { %v918_v8 = vadd.f32 %v917_v47, %v901_v2  ;;  %v932_v26 = vadd.f32 %v931_v46, %v900_v10 }
 0x146   : > { %v919_v51 = vadd.f32 %v918_v8, %v903_v48  ;;  %v933_v55 = vadd.f32 %v932_v26, %v902_v50 }
 0x148   : > { %v934_v24 = vadd.f32 %v933_v55, %v904_v52  ;;  %939 = vst [vmem:[%s328_s13] sm:$0xff] (!%p1127_p5), %v919_v51 }
 0x14a   : > { %940 = vst [vmem:[%s328_s13 + $0x8] sm:$0xff] %v934_v24 }
 0x14b PF: > { %p1128_p6 = scmp.eq.s32.totalorder %s1409_s17, 0 }
 0x14d   : > { %944 = sbr.rel (%p1128_p6) target bundleno = 341 (0x155), region = 119 }
 0x151   : > { %v945_v40 = vld [vmem:[%s328_s13] sm:$0xff] (!%p1128_p6)  ;;  %v946_v30 = vld [vmem:[%s328_s13 + $0x8] sm:$0xff] (!%p1128_p6) }
 0x152   : > { %v947_v34 = vadd.f32 (!%p1128_p6), %v945_v40, %v919_v51  ;;  %v948_v54 = vadd.f32 (!%p1128_p6), %v946_v30, %v934_v24 }
 0x154   : > { %949 = vst [vmem:[%s328_s13] sm:$0xff] %v947_v34  ;;  %950 = vst [vmem:[%s328_s13 + $0x8] sm:$0xff] %v948_v54 }
 0x155 PF: > { %s1130_s27 = sshll.u32 %s1413_s18, 7  ;;  %s964_s11 = sshll.u32 %s328_s13, 4  ;;  %s1693_s11 = int_to_ptr.vmem [resolvable:$true] %s964_s11 }
 0x156   : > { %s1691_s10 = scalar_lea.hbm %s1756_s3, %s1130_s27  ;;  %s952_s17 = scalar_lea.sflag [#allocation5], %s1565_s30 }
 0x157   : > { %s1315_s22 = scalar_lea.vmem %s1693_s11, 256  ;;  %s1428_s23 = smov [#allocation4]  }
 0x158   : > { %p1316_p7 = scmp.ne.s32.totalorder %s1693_s11, %s1315_s22  ;;  %s1319_s26 = sshll.u32 %s1428_s23, 4  ;;  %s1320_s26 = int_to_ptr.vmem [resolvable:$false] %s1319_s26 }
 0x159   : > { %s1321_s18 = scalar_lea.vmem %s1320_s26, 512  ;;  %p1322_p11 = scmp.lt.s32.totalorder %s1693_s11, %s1320_s26 }
 0x15a   : > { %p1317_p9 = pnand %p1316_p7, %p1528_p8  ;;  %p1323_p12 = scmp.lt.s32.totalorder %s1321_s18, %s1315_s22 }
 0x15c   : > { %p1318_p10 = pneg %p1317_p9  ;;  %p1324_p0 = por %p1323_p12, %p1322_p11 }
 0x15e   : > { %p1325_p1 = pnand %p1324_p0, %p1318_p10 }
 0x160   : > { %1328 = shalt.err (!%p1325_p1)
}
 0x161   : > { %s1329_s28 = scalar_lea.hbm %s1691_s10, 256  ;;  %s1333_s27 = scalar_lea.hbm %s1756_s3, 512 }
 0x162   : > { %p1330_p2 = scmp.ne.s32.totalorder %s1691_s10, %s1329_s28  ;;  %p1334_p5 = scmp.lt.u32.totalorder %s1691_s10, %s1756_s3 }
 0x163   : > { %p1335_p6 = scmp.lt.u32.totalorder %s1333_s27, %s1329_s28  ;;  %p1337_p9 = scmp.lt.u32.totalorder %s1329_s28, %s1691_s10 }
 0x164   : > { %p1331_p3 = pnand %p1330_p2, %p1528_p8 }
 0x165   : > { %p1336_p7 = por %p1335_p6, %p1334_p5 }
 0x166   : > { %p1332_p4 = pneg %p1331_p3 }
 0x167   : > { %p1338_p10 = por %p1337_p9, %p1336_p7 }
 0x169   : > { %p1339_p11 = pnand %p1338_p10, %p1332_p4 }
 0x16b   : > { %1342 = shalt.err (!%p1339_p11)
}
 0x16c   : > { %s1429_s22 = smov 128   ;;  %s1430_s23 = smov 256  }
 0x16d   : > { %s1431_s26 = smov 8  }
 0x16e   : > { %1202 = dma.vmem_to_hbm [thread:$0]  (%p1528_p8), %s1693_s11, 256, %s1691_s10, %s952_s17, %s1429_s22, %s1430_s23, %s1431_s26  }
 0x16f PF: > { %p1208_p12 = scmp.ge.s32.totalorder %s1425_s21, 2  ;;  %s979_s18 = sand.u32 1, %s1389_s12  }
 0x170   : > { %s980_s28 = scalar_lea.sflag [#allocation5], %s979_s18 }
 0x171   : > { %p1205_p0 = pnand %p1208_p12, %p1542_p13 }
 0x173   : > { %1384 = dma.done.wait (!%p1205_p0), %s980_s28, 256  }
 0x174   : > { %1386 = vsyncadd (!%p1205_p0), %s980_s28, 4294967040  ;;  %s16_s21 = sadd.s32 1, %s1425_s21   ;;  %s1761_s12 = smov %s1401_s15 }
 0x175   : > { %p13_p1 = scmp.ge.s32.totalorder %s16_s21, 6   ;;  %s1762_s13 = smov %s1397_s14 }
 0x176   : > { %s1763_s14 = smov %s1540_s8  ;;  %s1764_s15 = smov %s1405_s16 }
 0x177   : > { %s1765_s16 = smov %s1537_s7  ;;  %s1766_s17 = smov %s1417_s19 }
 0x178   : > { %s1767_s18 = smov %s1421_s20  ;;  %s1768_s19 = smov %s1771_s24 }
 0x179   : > { %s1769_s20 = smov %s1775_s25  ;;  %15 = sbr.rel (!%p13_p1) target bundleno = 6 (0x6), region = 170 }
 0x180   :  { %985 = vsyncpa [#allocation5], 1 }
 0x181   :  { %987 = vsyncpa [#allocation5 + $0x1], 1 }

</bundles_post_ra>
